<compile_context>
chip_gen: v7x
topology: tpu7x:2x2x1
jax: 0.10.0
libtpu: 0.0.40
codegen_flags: <defaults>
</compile_context>

<pallas_src>
import functools

import jax
import jax.numpy as jnp
from jax.experimental import pallas as pl
from jax.experimental.pallas import tpu as pltpu


_LANE = 128                   # TPU vreg lane width
_MAX_LANE_CHUNKS = 64         # cap on statically-unrolled 128-lane chunks per step


def _round_up(v, m):
    return ((v + m - 1) // m) * m


# ---------------------------------------------------------------------------
# In-kernel helpers
# ---------------------------------------------------------------------------

def _fused_mlp_store(avg, mx, w1t_ref, w2t_ref, o_ref):
    """sigmoid(fc2(relu(fc1(avg))) + fc2(relu(fc1(mx)))), one fused matmul pair."""
    tile_n = avg.shape[0]
    pooled = jnp.concatenate([avg, mx], axis=0)             # (2*tile_n, C) f32
    w1t = w1t_ref[...]                                      # (C, Cr) native dtype
    w2t = w2t_ref[...]                                      # (Cr, C) native dtype
    # Feed sub-f32 weights to the MXU in their native dtype (f32 accumulate);
    # cast only the tiny LHS instead of upcasting the weights on the VPU.
    lhs1 = pooled if w1t.dtype == jnp.float32 else pooled.astype(w1t.dtype)
    h = jnp.maximum(jnp.dot(lhs1, w1t, preferred_element_type=jnp.float32), 0.0)
    lhs2 = h if w2t.dtype == jnp.float32 else h.astype(w2t.dtype)
    y = jnp.dot(lhs2, w2t, preferred_element_type=jnp.float32)    # (2*tile_n, C)
    gate = jax.nn.sigmoid(y[:tile_n, :] + y[tile_n:, :])          # (tile_n, C)
    o_ref[...] = gate[None, :, :].astype(o_ref.dtype)


def _tree(parts, op):
    while len(parts) > 1:
        nxt = [op(parts[i], parts[i + 1]) for i in range(0, len(parts) - 1, 2)]
        if len(parts) % 2:
            nxt.append(parts[-1])
        parts = nxt
    return parts[0]


def _chunked_partials(x_ref, num_chunks, valid=None):
    """Per-step partial sum/max with the 128-lane axis kept uncollapsed.

    Only lane-aligned static slicing + VPU adds/maxes here; the cross-lane
    (XLU) collapse and the C sublane->lane relayout are deferred to finalize.
    Returns two (tile_n, C, 128) f32 arrays.
    """
    sums, maxs = [], []
    for i in range(num_chunks):
        sl = slice(i * _LANE, (i + 1) * _LANE)
        c = x_ref[:, :, sl].astype(jnp.float32)             # (tile_n, C, 128)
        if valid is None:
            sums.append(c)
            maxs.append(c)
        else:
            v = valid[:, :, sl]
            # Masking is done in f32, so dtypes without an inf (fp8/int) are fine.
            sums.append(jnp.where(v, c, 0.0))
            maxs.append(jnp.where(v, c, -jnp.inf))
    return _tree(sums, lambda a, b: a + b), _tree(maxs, jnp.maximum)


# ---------------------------------------------------------------------------
# Kernels
# ---------------------------------------------------------------------------

def _ca_single_step_kernel(x_ref, w1t_ref, w2t_ref, o_ref, *, inv_hw):
    # Whole spatial extent in one block: pool + MLP in a single visit.
    x = x_ref[...]                                          # (tile_n, C, HW)
    avg = jnp.sum(x, axis=-1, dtype=jnp.float32) * jnp.float32(inv_hw)
    mx = jnp.max(x, axis=-1).astype(jnp.float32)
    _fused_mlp_store(avg, mx, w1t_ref, w2t_ref, o_ref)


def _ca_multi_step_kernel(x_ref, w1t_ref, w2t_ref, o_ref, acc_sum, acc_max,
                          *, hw_total, tile_hw, inv_hw, needs_mask):
    # x_ref: (tile_n, C, tile_hw); acc_sum/acc_max: (tile_n, C, 128) f32.
    hw_step = pl.program_id(1)
    last = pl.num_programs(1) - 1
    num_chunks = tile_hw // _LANE

    @pl.when(hw_step == 0)
    def _init():
        acc_sum[...] = jnp.zeros_like(acc_sum)
        acc_max[...] = jnp.full_like(acc_max, -jnp.inf)

    def _accumulate(valid=None):
        s, m = _chunked_partials(x_ref, num_chunks, valid)
        acc_sum[...] += s
        acc_max[...] = jnp.maximum(acc_max[...], m)

    if needs_mask:
        # Unmasked steady-state path; the iota/compare/select masking only
        # runs on the single trailing partial tile.
        @pl.when(hw_step < last)
        def _steady():
            _accumulate()

        @pl.when(hw_step == last)
        def _tail():
            lane = jax.lax.broadcasted_iota(jnp.int32, (1, 1, tile_hw), 2)
            valid = (hw_step * tile_hw + lane) < hw_total
            _accumulate(valid)
    else:
        _accumulate()

    @pl.when(hw_step == last)
    def _finalize():
        avg = jnp.sum(acc_sum[...], axis=-1) * jnp.float32(inv_hw)   # (tile_n, C)
        mx = jnp.max(acc_max[...], axis=-1)
        _fused_mlp_store(avg, mx, w1t_ref, w2t_ref, o_ref)


# ---------------------------------------------------------------------------
# Host-side sizing heuristics
# ---------------------------------------------------------------------------

def _tpu_memory_profile():
    """Return (vmem_limit_bytes, per_buffer_budget_bytes, assume_two_tensorcores)."""
    mib = 1024 * 1024
    kind = ""
    try:
        kind = jax.devices()[0].device_kind.lower()
    except Exception:
        kind = ""
    vmem_cap = None
    try:
        vmem_cap = getattr(pltpu.get_tpu_info(), "vmem_capacity_bytes", None)
    except Exception:
        vmem_cap = None

    if ("v5" in kind) or ("v6" in kind):
        # v5e/v5p/v6e class: 128 MiB physical VMEM, one TensorCore per chip.
        limit, budget, two_cores = 64 * mib, 14 * mib, False
    else:
        # v7x / unknown: assume 64 MiB VMEM per TensorCore, 2 TCs per chip.
        limit, budget, two_cores = 48 * mib, 8 * mib, True
    if vmem_cap:
        limit = min(limit, int(0.75 * vmem_cap))
        budget = min(budget, max(1 * mib, limit // 4))
    return limit, budget, two_cores


def _choose_tile_n(n, c, itemsize, per_buffer_budget, two_cores):
    # Only exact divisors of N: no partial N tiles anywhere, so neither the
    # input reads nor the output writes ever go out of bounds along N.
    divisors = [d for d in range(min(n, 8), 0, -1) if n % d == 0]
    if two_cores and n >= 2:
        # Prefer >= 2 blocks along the "parallel" N axis so both TensorCores
        # stream HBM (the whole kernel is bandwidth-bound).
        pref = [d for d in divisors if n // d >= 2]
        rest = [d for d in divisors if d not in pref]
        divisors = pref + rest
    for d in divisors:
        # Even the minimum 128-lane x block must fit the per-buffer budget.
        if d * c * _LANE * itemsize <= per_buffer_budget:
            return d
    return 1
    # TODO(synk): for N == 1 on v7x, split the HW reduction into two
    # core-parallel halves with a tiny second-pass combine to use both cores.


def _choose_tile_hw(tile_n, c, hw, itemsize, per_buffer_budget):
    if tile_n * c * hw * itemsize <= per_buffer_budget:
        return hw                                   # single grid step over HW
    lanes = (per_buffer_budget // (tile_n * c * itemsize)) // _LANE * _LANE
    lanes = max(_LANE, lanes)                       # never below one lane tile
    lanes = min(lanes, _MAX_LANE_CHUNKS * _LANE)    # bound static chunk unroll
    return min(lanes, hw)


def _estimate_vmem_bytes(tile_n, c, cr, tile_hw, x_item, w_item, o_item, multi_step):
    def slab(rows, cols, item):
        return _round_up(rows, 8) * _round_up(cols, _LANE) * item
    x_bufs = 2 * tile_n * slab(c, tile_hw, x_item)              # double-buffered x
    w_bufs = 2 * (slab(c, cr, w_item) + slab(cr, c, w_item))    # resident weights
    o_bufs = 2 * slab(tile_n, c, o_item)
    acc = 2 * tile_n * slab(c, _LANE, 4) if multi_step else 0   # f32 accumulators
    return x_bufs + w_bufs + o_bufs + acc


# ---------------------------------------------------------------------------
# Public wrapper
# ---------------------------------------------------------------------------

def channel_attention(x, w1, w2, *, tile_hw=None):
    """CBAM channel attention.

    x:  (N, C, H, W)
    w1: (C//16, C)   fc1 weight (Conv2d(C, C//16, 1, bias=False), squeezed)
    w2: (C, C//16)   fc2 weight
    returns: (N, C, 1, 1), sigmoid-activated channel gates.
    """
    N, C, H, W = x.shape
    Cr = w1.shape[0]
    assert w1.shape == (Cr, C) and w2.shape == (C, Cr)

    HW = H * W
    x_flat = x.reshape(N, C, HW)            # channels on sublanes, spatial on lanes
    w1t = jnp.transpose(w1)                 # (C, Cr)
    w2t = jnp.transpose(w2)                 # (Cr, C)

    vmem_limit, per_buf_budget, two_cores = _tpu_memory_profile()
    x_item = jnp.dtype(x.dtype).itemsize
    w_item = jnp.dtype(w1.dtype).itemsize

    tile_n = _choose_tile_n(N, C, x_item, per_buf_budget, two_cores)
    n_tiles = N // tile_n                   # exact by construction
    if tile_hw is None:
        tile_hw = _choose_tile_hw(tile_n, C, HW, x_item, per_buf_budget)
    tile_hw = min(tile_hw, HW)
    # (8,128) rule: the lane tile must be a multiple of 128 unless it spans HW.
    assert tile_hw == HW or tile_hw % _LANE == 0
    hw_steps = pl.cdiv(HW, tile_hw)
    multi_step = hw_steps > 1
    needs_mask = (HW % tile_hw) != 0

    # Keep the scoped-VMEM limit explicit and always covering what we allocate.
    est = _estimate_vmem_bytes(tile_n, C, Cr, tile_hw, x_item, w_item, x_item,
                               multi_step)
    vmem_limit = max(vmem_limit, int(1.25 * est) + (1 << 20))

    if multi_step:
        grid = (n_tiles, hw_steps)
        kernel = functools.partial(
            _ca_multi_step_kernel, hw_total=HW, tile_hw=tile_hw,
            inv_hw=1.0 / HW, needs_mask=needs_mask)
        in_specs = [
            # TODO(synk): sweep pipeline_mode=pl.Buffered(3) on this spec once
            # the third buffer is folded into the VMEM accounting.
            pl.BlockSpec((tile_n, C, tile_hw), lambda n, h: (n, 0, h)),
            pl.BlockSpec((C, Cr), lambda n, h: (0, 0)),     # resident weights
            pl.BlockSpec((Cr, C), lambda n, h: (0, 0)),
        ]
        out_specs = pl.BlockSpec((1, tile_n, C), lambda n, h: (n, 0, 0))
        scratch = [pltpu.VMEM((tile_n, C, _LANE), jnp.float32),   # acc_sum
                   pltpu.VMEM((tile_n, C, _LANE), jnp.float32)]   # acc_max
        dim_sem = ("parallel", "arbitrary")
    else:
        grid = (n_tiles,)
        kernel = functools.partial(_ca_single_step_kernel, inv_hw=1.0 / HW)
        in_specs = [
            pl.BlockSpec((tile_n, C, HW), lambda n: (n, 0, 0)),
            pl.BlockSpec((C, Cr), lambda n: (0, 0)),
            pl.BlockSpec((Cr, C), lambda n: (0, 0)),
        ]
        out_specs = pl.BlockSpec((1, tile_n, C), lambda n: (n, 0, 0))
        scratch = []
        dim_sem = ("parallel",)

    cost = pl.CostEstimate(
        flops=2 * N * C * HW + 4 * (2 * N) * C * Cr,
        transcendentals=N * C,
        bytes_accessed=(N * C * HW * x_item + 2 * C * Cr * w_item
                        + N * C * x_item),
    )

    out = pl.pallas_call(
        kernel,
        out_shape=jax.ShapeDtypeStruct((n_tiles, tile_n, C), x.dtype),
        grid_spec=pltpu.PrefetchScalarGridSpec(
            num_scalar_prefetch=0,
            grid=grid,
            in_specs=in_specs,
            out_specs=out_specs,
            scratch_shapes=scratch,
        ),
        compiler_params=pltpu.CompilerParams(
            dimension_semantics=dim_sem,
            vmem_limit_bytes=vmem_limit,
        ),
        cost_estimate=cost,
    )(x_flat, w1t, w2t)

    # n_tiles * tile_n == N exactly; C stayed lane-dense through the store.
    return out.reshape(N, C, 1, 1)


def channel_attention_ref(x, w1, w2):
    """Pure-JAX reference matching the PyTorch forward."""
    avg = jnp.mean(x, axis=(2, 3))                     # (N, C)
    mx = jnp.max(x, axis=(2, 3))                       # (N, C)

    def mlp(p):
        h = jnp.maximum(p @ w1.T, 0.0)                 # (N, Cr)
        return h @ w2.T                                # (N, C)

    out = jax.nn.sigmoid(mlp(avg) + mlp(mx))
    return out[:, :, None, None]


if __name__ == "__main__":
    def run_case(N, C, H, W, tile_hw=None):
        Cr = C // 16                                   # module hardcodes //16
        key = jax.random.PRNGKey(0)
        kx, k1, k2 = jax.random.split(key, 3)
        x = jax.random.normal(kx, (N, C, H, W), dtype=jnp.float32)
        w1 = jax.random.normal(k1, (Cr, C), dtype=jnp.float32) * 0.1   # fc1
        w2 = jax.random.normal(k2, (C, Cr), dtype=jnp.float32) * 0.1   # fc2

        out = jax.block_until_ready(channel_attention(x, w1, w2, tile_hw=tile_hw))
        ref = channel_attention_ref(x, w1, w2)
        assert out.shape == (N, C, 1, 1)
        assert jnp.allclose(out, ref, atol=2e-5, rtol=2e-5), (
            f"mismatch vs reference for shape {(N, C, H, W)}, tile_hw={tile_hw}")

    # Small shapes consistent with the module (C >= 16 so C // 16 >= 1).
    run_case(2, 32, 16, 16)                 # single-step path (whole HW per block)
    run_case(2, 32, 16, 16, tile_hw=128)    # multi-step accumulation over HW grid
    run_case(2, 32, 15, 15, tile_hw=128)    # non-divisible HW -> masked trailing tile
    run_case(2, 32, 20, 20, tile_hw=256)    # multiple 128-lane chunks + masked tail
    run_case(4, 48, 9, 9)                   # odd spatial size, Cr = 3, N tiling
    run_case(1, 32, 16, 16)                 # batch of one

    print("KERNEL_OK")
</pallas_src>

<mosaic_0001>
module attributes {stable_mosaic.version = 11 : i64} {
  func.func @_ca_single_step_kernel(%arg0: i32, %arg1: memref<1x32x256xf32, #tpu.memory_space<vmem>>, %arg2: memref<32x2xf32, #tpu.memory_space<vmem>>, %arg3: memref<2x32xf32, #tpu.memory_space<vmem>>, %arg4: memref<1x1x32xf32, #tpu.memory_space<vmem>>) attributes {dimension_semantics = [#tpu.dimension_semantics<parallel>], iteration_bounds = array<i64: 2>, scalar_prefetch = 0 : i64, scratch_operands = 0 : i64, tpu.core_type = #tpu.core_type<tc>, window_params = [{transform_indices = @transform_0, window_bounds = array<i64: 1, 32, 256>}, {pipeline_mode = #tpu.pipeline_mode<synchronous>, transform_indices = @transform_1, window_bounds = array<i64: 32, 2>}, {pipeline_mode = #tpu.pipeline_mode<synchronous>, transform_indices = @transform_2, window_bounds = array<i64: 2, 32>}, {transform_indices = @transform_3, window_bounds = array<i64: 1, 1, 32>}]} {
    %c0 = arith.constant 0 : index
    %c0_0 = arith.constant 0 : index
    %c0_1 = arith.constant 0 : index
    %0 = vector.load %arg1[%c0, %c0_0, %c0_1] : memref<1x32x256xf32, #tpu.memory_space<vmem>>, vector<1x32x256xf32>
    %cst = arith.constant dense<0.000000e+00> : vector<1x32xf32>
    %1 = vector.multi_reduction <add>, %0, %cst [2] : vector<1x32x256xf32> to vector<1x32xf32>
    %cst_2 = arith.constant 3.906250e-03 : f32
    %2 = vector.broadcast %cst_2 : f32 to vector<1x32xf32>
    %3 = arith.mulf %1, %2 : vector<1x32xf32>
    %cst_3 = arith.constant dense<0xFF800000> : vector<1x32xf32>
    %4 = vector.multi_reduction <maximumf>, %0, %cst_3 [2] : vector<1x32x256xf32> to vector<1x32xf32>
    %5 = tpu.concatenate %3, %4 in 0 : vector<1x32xf32>, vector<1x32xf32> -> vector<2x32xf32>
    %c0_4 = arith.constant 0 : index
    %c0_5 = arith.constant 0 : index
    %6 = vector.load %arg2[%c0_4, %c0_5] : memref<32x2xf32, #tpu.memory_space<vmem>>, vector<32x2xf32>
    %c0_6 = arith.constant 0 : index
    %c0_7 = arith.constant 0 : index
    %7 = vector.load %arg3[%c0_6, %c0_7] : memref<2x32xf32, #tpu.memory_space<vmem>>, vector<2x32xf32>
    %cst_8 = arith.constant dense<0.000000e+00> : vector<2x2xf32>
    %8 = tpu.matmul %5, %6, %cst_8 {dimension_numbers = #tpu.dot_dimension_numbers<[1], [0], [0], [1], [0, 0, 1, 1], [], []>} : vector<2x32xf32>, vector<32x2xf32>, vector<2x2xf32> -> vector<2x2xf32>
    %cst_9 = arith.constant 0.000000e+00 : f32
    %9 = vector.broadcast %cst_9 : f32 to vector<2x2xf32>
    %10 = arith.maximumf %8, %9 : vector<2x2xf32>
    %cst_10 = arith.constant dense<0.000000e+00> : vector<2x32xf32>
    %11 = tpu.matmul %10, %7, %cst_10 {dimension_numbers = #tpu.dot_dimension_numbers<[1], [0], [0], [1], [0, 0, 1, 1], [], []>} : vector<2x2xf32>, vector<2x32xf32>, vector<2x32xf32> -> vector<2x32xf32>
    %12 = vector.extract_strided_slice %11 {offsets = [0, 0], sizes = [1, 32], strides = [1, 1]} : vector<2x32xf32> to vector<1x32xf32>
    %13 = vector.extract_strided_slice %11 {offsets = [1, 0], sizes = [1, 32], strides = [1, 1]} : vector<2x32xf32> to vector<1x32xf32>
    %14 = arith.addf %12, %13 : vector<1x32xf32>
    %15 = arith.negf %14 : vector<1x32xf32>
    %16 = math.exp %15 : vector<1x32xf32>
    %cst_11 = arith.constant 1.000000e+00 : f32
    %17 = vector.broadcast %cst_11 : f32 to vector<1x32xf32>
    %18 = arith.addf %17, %16 : vector<1x32xf32>
    %19 = arith.divf %17, %18 : vector<1x32xf32>
    %20 = vector.shape_cast %19 : vector<1x32xf32> to vector<1x1x32xf32>
    %c0_12 = arith.constant 0 : index
    %c0_13 = arith.constant 0 : index
    %c0_14 = arith.constant 0 : index
    %21 = vector.load %arg4[%c0_12, %c0_13, %c0_14] : memref<1x1x32xf32, #tpu.memory_space<vmem>>, vector<1x1x32xf32>
    tpu.vector_store %arg4[%c0_12, %c0_13, %c0_14], %20 {strides = array<i32>} : memref<1x1x32xf32, #tpu.memory_space<vmem>>, vector<1x1x32xf32>,
    return
  }
  func.func @transform_0(%arg0: i32) -> (i32, i32, i32) {
    %c0_i32 = arith.constant 0 : i32
    %c0_i32_0 = arith.constant 0 : i32
    %c0_i32_1 = arith.constant 0 : i32
    return %arg0, %c0_i32, %c0_i32_0 : i32, i32, i32
  }
  func.func @transform_1(%arg0: i32) -> (i32, i32) {
    %c0_i32 = arith.constant 0 : i32
    %c0_i32_0 = arith.constant 0 : i32
    %c0_i32_1 = arith.constant 0 : i32
    return %c0_i32, %c0_i32_0 : i32, i32
  }
  func.func @transform_2(%arg0: i32) -> (i32, i32) {
    %c0_i32 = arith.constant 0 : i32
    %c0_i32_0 = arith.constant 0 : i32
    %c0_i32_1 = arith.constant 0 : i32
    return %c0_i32, %c0_i32_0 : i32, i32
  }
  func.func @transform_3(%arg0: i32) -> (i32, i32, i32) {
    %c0_i32 = arith.constant 0 : i32
    %c0_i32_0 = arith.constant 0 : i32
    %c0_i32_1 = arith.constant 0 : i32
    return %arg0, %c0_i32, %c0_i32_0 : i32, i32, i32
  }
}

</mosaic_0001>

<bundles_post_ra>
// kernel: tpu_custom_call.1
= control target key start
LH: loop header
LB: loop body
LE: loop exit
PB: predicated region body
PF: predicated region fallthrough
CT: control target
= control target key end

     0   :  { %8 = vsyncpa [#allocation3], 0  ;;  %s934_s0 = inlined_call_operand.hbm [shape: f32[2,32,256], index: 0, kind: input, shape index: {}]   ;;  %s935_s1 = inlined_call_operand.vmem [shape: f32[32,2], index: 1, kind: input, shape index: {}]   ;;  %s936_s2 = inlined_call_operand.vmem [shape: f32[2,32], index: 2, kind: input, shape index: {}]   ;;  %s937_s3 = inlined_call_operand.hbm [shape: f32[2,1,32], index: 3, kind: output, shape index: {}]  }
   0x1   :  { %10 = vsyncpa [#allocation3 + $0x1], 0 }
   0x2   :  { %11 = vsyncpa [#allocation4], 0 }
   0x3   :  { %13 = vsyncpa [#allocation4 + $0x1], 0  ;;  %s756_s12 = smov 0   ;;  %s758_s13 = smov 0  }
   0x4   :  { %s760_s14 = smov 0   ;;  %s762_s15 = smov 0  }
   0x5 LB: > { %s777_s16 = sadd.s32 4294967295, %s727_s15   ;;  %s531_s17 = sadd.s32 4294967294, %s727_s15   ;;  %s727_s15 = sphi %s762_s15, %s950_s15   ;;  %s723_s14 = sphi %s760_s14, %s949_s14   ;;  %s719_s13 = sphi %s758_s13, %s948_s13   ;;  %s715_s12 = sphi %s756_s12, %s947_s12  }
   0x6   : > { %s781_s18 = sadd.s32 1, %s727_s15   ;;  %s26_s19 = sadd.s32 1, %s723_s14 }
   0x7   : > { %s23_s20 = ssub.s32 %s727_s15, %s781_s18  ;;  %p33_p0 = scmp.ne.s32.totalorder %s723_s14, %s719_s13 }
   0x8   : > { %p24_p1 = scmp.eq.s32.totalorder %s23_s20, 0  ;;  %p34_p2 = scmp.eq.s32.totalorder %s727_s15, 0 }
   0x9   : > { %p39_p3 = scmp.ne.s32.totalorder %s719_s13, %s715_s12  ;;  %p40_p4 = scmp.eq.s32.totalorder %s777_s16, 0 }
   0xa   : > { %s793_s21 = scalar_select %p24_p1, %s723_s14, %s26_s19  }
   0xb   : > { %p795_p5 = por %p34_p2, %p33_p0  ;;  %p799_p6 = por %p40_p4, %p39_p3 }
   0xc   : > { %p105_p7 = scmp.eq.s32.totalorder %s777_s16, 1  ;;  %p111_p8 = scmp.eq.s32.totalorder %s531_s17, 1 }
   0xd   : > { %p588_p10 = scmp.lt.s32.totalorder %s727_s15, 2  ;;  %s137_s26 = sand.u32 1, %s723_s14  }
   0xe   : > { %p806_p11 = por %p105_p7, %p33_p0  ;;  %p810_p12 = por %p111_p8, %p39_p3 }
   0xf   : > { %s546_s27 = sshll.u32 %s727_s15, 10  ;;  %s534_s28 = sshll.u32 %s137_s26, 6 }
  0x10   : > { %s941_s24 = scalar_select %p806_p11, 1, 0 }
  0x11   : > { %s942_s25 = scalar_select %p810_p12, 1, 0 }
  0x12   : > { %s819_s4 = scalar_lea.hbm %s934_s0, %s546_s27  ;;  %s141_s5 = scalar_lea.vmem [#allocation2], %s534_s28 }
  0x13   : > { %s148_s6 = sshll.u32 %s141_s5, 4  ;;  %p823_p13 = pnand %p588_p10, %p795_p5  ;;  %s827_s6 = int_to_ptr.vmem [resolvable:$true] %s148_s6 }
  0x14   : > { %s829_s8 = scalar_lea.sflag [#allocation3], %s137_s26  ;;  %s631_s9 = scalar_lea.hbm %s819_s4, 1024 }
  0x15   : > { %p632_p0 = scmp.ne.s32.totalorder %s819_s4, %s631_s9  ;;  %p633_p1 = pneg %p823_p13 }
  0x16   : > { %s636_s17 = scalar_lea.hbm %s934_s0, 2048  ;;  %p637_p4 = scmp.lt.u32.totalorder %s819_s4, %s934_s0 }
  0x17   : > { %p634_p2 = pnand %p633_p1, %p632_p0  ;;  %p638_p5 = scmp.lt.u32.totalorder %s636_s17, %s631_s9 }
  0x18   : > { %p640_p8 = scmp.lt.u32.totalorder %s631_s9, %s819_s4 }
  0x19   : > { %p635_p3 = pneg %p634_p2  ;;  %p639_p7 = por %p638_p5, %p637_p4 }
  0x1b   : > { %p641_p10 = por %p640_p8, %p639_p7 }
  0x1d   : > { %p642_p9 = pnand %p641_p10, %p635_p3 }
  0x1f   : > { %645 = shalt.err (!%p642_p9)
}
  0x20   : > { %s646_s22 = scalar_lea.vmem %s827_s6, 1024  ;;  %s729_s26 = smov [#allocation2]  }
  0x21   : > { %p647_p0 = scmp.ne.s32.totalorder %s827_s6, %s646_s22  ;;  %s651_s27 = sshll.u32 %s729_s26, 4  ;;  %s652_s27 = int_to_ptr.vmem [resolvable:$false] %s651_s27 }
  0x22   : > { %s653_s28 = scalar_lea.vmem %s652_s27, 2048  ;;  %p654_p11 = scmp.lt.s32.totalorder %s827_s6, %s652_s27 }
  0x23   : > { %p649_p2 = pnand %p647_p0, %p633_p1  ;;  %p655_p4 = scmp.lt.s32.totalorder %s653_s28, %s646_s22 }
  0x25   : > { %p650_p12 = pneg %p649_p2  ;;  %p656_p5 = por %p655_p4, %p654_p11 }
  0x27   : > { %p657_p7 = pnand %p656_p5, %p650_p12 }
  0x29   : > { %660 = shalt.err (!%p657_p7)
}
  0x2a   : > { %s730_s29 = smov 256   ;;  %s731_s30 = smov 16  }
  0x2b   : > { %583 = dma.hbm_to_vmem [thread:$0]  (!%p823_p13), %s819_s4, 1024, %s827_s6, %s829_s8, %s730_s29, %s730_s29, %s731_s30  }
  0x2c   : > { %p537_p9 = scmp.ge.s32.totalorder %s727_s15, 1  ;;  %p156_p1 = scmp.lt.s32.totalorder %s727_s15, 3 }
  0x2e   : > { %p157_p3 = pnand %p537_p9, %p156_p1 }
  0x2f   : > { %s860_s5 = sand.u32 (!%p157_p3), 1, %s719_s13  }
  0x30   : > { %160 = sbr.rel (%p157_p3) target bundleno = 689 (0x2b1), region = 32  ;;  %s538_s9 = sshll.u32 (!%p157_p3), %s860_s5, 6 }
  0x31   : > { %s163_s10 = scalar_lea.sflag (!%p157_p3), [#allocation3], %s860_s5  ;;  %s166_s11 = scalar_lea.vmem (!%p157_p3), [#allocation2], %s538_s9 }
  0x37   : > { %706 = dma.done.wait (%p799_p6), %s163_s10, 1024  }
  0x38   : > { %708 = vsyncadd (%p799_p6), %s163_s10, 4294966272  ;;  %v192_v0 = vld [vmem:[%s166_s11 + $0x20] sm:$0xff]  ;;  %v193_v1 = vld [vmem:[%s166_s11 + $0x28] sm:$0xff]  ;;  %v732_v19 = vmov 0.0|0.0   ;;  %vm733_vm0 = vmmov 0   ;;  %v734_v23 = vmov 0.0   ;;  %v228_v24 = vlaneseq }
  0x39   : > { %v188_v2 = vld [vmem:[%s166_s11] sm:$0xff]  ;;  %v202_v3 = vadd.f32 %v193_v1, %v192_v0  ;;  %v189_v4 = vld [vmem:[%s166_s11 + $0x8] sm:$0xff]  ;;  %v194_v5 = vld [vmem:[%s166_s11 + $0x30] sm:$0xff]  ;;  %v218_v15 = vmax.f32 %v192_v0, %v193_v1  ;;  %570 = vmatprep.subr.bf16.mxu0 %v732_v19  ;;  %562 = vmatprep.mubr.msk.f32.mxu0 %vm733_vm0, %v734_v23  ;;  %vm239_vm1 = vcmask 130112   ;;  %vm246_vm2 = vcmask 195712   ;;  %s543_s27 = sshll.u32 %s777_s16, 4 }
  0x3a   : > { %v195_v6 = vld [vmem:[%s166_s11 + $0x38] sm:$0xff]  ;;  %v196_v7 = vadd.f32 %v189_v4, %v188_v2  ;;  %v190_v8 = vld [vmem:[%s166_s11 + $0x10] sm:$0xff]  ;;  %v212_v13 = vmax.f32 %v188_v2, %v189_v4  ;;  %v282_v16 = vld [vmem:[%s935_s1] sm:$0xff]  ;;  %565 = vmatprep.subr.mxu1 %v734_v23  ;;  %567 = vmatprep.mubr.msk.f32.mxu1 %vm733_vm0, %v734_v23  ;;  %v229_v25 = vand.u32 127, %v228_v24  ;;  %v231_v28 = vshrl.u32 %v228_v24, 7  ;;  %s187_s28 = scalar_lea.vmem [#allocation5], %s860_s5  ;;  %s890_s10 = scalar_lea.hbm %s937_s3, %s543_s27 }
  0x3b   : > { %v191_v9 = vld [vmem:[%s166_s11 + $0x18] sm:$0xff]  ;;  %203 = vadd.xlane.f32.xlu1 %v202_v3  ;;  %v205_v10 = vadd.f32 %v195_v6, %v194_v5  ;;  %v221_v14 = vmax.f32 %v194_v5, %v195_v6  ;;  %v283_v17 = vld [vmem:[%s935_s1 + $0x8] sm:$0xff]  ;;  %v284_v20 = vld [vmem:[%s935_s1 + $0x10] sm:$0xff]  ;;  %vm253_vm3 = vcmask 261312   ;;  %vm280_vm4 = vcmask 1040384   ;;  %s465_s29 = sshll.u32 %s187_s28, 4  ;;  %s892_s29 = int_to_ptr.vmem [resolvable:$true] %s465_s29 }
  0x3c   : > { %197 = vadd.xlane.f32.xlu0 %v196_v7  ;;  %v199_v11 = vadd.f32 %v191_v9, %v190_v8  ;;  %v215_v12 = vmax.f32 %v190_v8, %v191_v9  ;;  %v571_v18 = vpack.c.bf16 %v283_v17, %v282_v16  ;;  %v285_v21 = vld [vmem:[%s935_s1 + $0x18] sm:$0xff]  ;;  %v234_v27 = vadd.s32 4294967288, %v229_v25  ;;  %v286_v61 = vld [vmem:[%s936_s2] sm:$0x3]  ;;  %s453_s11 = scalar_lea.sflag [#allocation4], %s860_s5  ;;  %s661_s23 = scalar_lea.vmem %s892_s29, 16 }
  0x3d   : > { %v574_v22 = vpack.c.bf16 %v285_v21, %v284_v20  ;;  %v241_v30 = vadd.s32 4294967280, %v229_v25  ;;  %v232_v33 = vsub.s32 %v229_v25, %v231_v28  ;;  %v248_v35 = vadd.s32 4294967272, %v229_v25  ;;  %p662_p6 = scmp.ne.s32.totalorder %s892_s29, %s661_s23  ;;  %p944_p11 = scmp.ne.s32.totalorder %s941_s24, 0 }
  0x3e   : > { %572 = vmatpush3.bf16.msra.mxu0 %v571_v18  ;;  %v237_v32 = vsub.s32 %v234_v27, %v231_v28  ;;  %vm287_vm5 = vcmask 261120   ;;  %vm366_vm6 = vcmask 1041408   ;;  %vm362_vm7 = vcmask 15360   ;;  %s735_s16 = smov [#allocation5]  }
  0x3f   : > { %206 = vadd.xlane.f32.xlu1 %v205_v10  ;;  %573 = vmatprep.subr.bf16.mxu0 %v732_v19  ;;  %v244_v38 = vsub.s32 %v241_v30, %v231_v28  ;;  %v251_v43 = vsub.s32 %v248_v35, %v231_v28  ;;  %vm450_vm8 = vcmask 253952   ;;  %p663_p12 = pnand %p662_p6, %p944_p11  ;;  %s665_s4 = sshll.u32 %s735_s16, 4  ;;  %s666_s4 = int_to_ptr.vmem [resolvable:$false] %s665_s4 }
  0x40   : > { %200 = vadd.xlane.f32.xlu0 %v199_v11  ;;  %566 = vmatpush3.msk.msra.mxu1 %vm366_vm6, %v286_v61  ;;  %s667_s6 = scalar_lea.vmem %s666_s4, 32  ;;  %p668_p8 = scmp.lt.s32.totalorder %s892_s29, %s666_s4 }
  0x41   : > { %p664_p13 = pneg %p663_p12  ;;  %p669_p10 = scmp.lt.s32.totalorder %s667_s6, %s661_s23 }
  0x42   : > { %575 = vmatpush3.bf16.msra.mxu0 %v574_v22 }
  0x43   : > { %216 = vmax.xlane.f32.xlu1 %v215_v12  ;;  %p670_p0 = por %p669_p10, %p668_p8 }
  0x44   : > { %213 = vmax.xlane.f32.xlu0 %v212_v13 }
  0x45   : > { %p671_p2 = pnand %p670_p0, %p664_p13 }
  0x47   : > { %222 = vmax.xlane.f32.xlu1 %v221_v14 }
  0x48   : > { %219 = vmax.xlane.f32.xlu0 %v218_v15 }
  0xc8   : > { %v204_v26 = vpop.xlane.xlu1 %203 }
  0xc9   : > { %v198_v29 = vpop.xlane.xlu0 %197  ;;  %v210_v39 = vmul.f32 0.00390625, %v204_v26 }
  0xca   : > { %v208_v34 = vmul.f32 0.00390625, %v198_v29 }
  0xcb   : > { %v245_v49 = vrot.slane %v210_v39, %v244_v38 }
  0xcc   : > { %v207_v31 = vpop.xlane.xlu1 %206  ;;  %v233_v42 = vrot.slane %v208_v34, %v232_v33 }
  0xcd   : > { %v201_v36 = vpop.xlane.xlu0 %200  ;;  %v211_v44 = vmul.f32 0.00390625, %v207_v31 }
  0xce   : > { %v209_v37 = vmul.f32 0.00390625, %v201_v36 }
  0xcf   : > { %v252_v51 = vrot.slane %v211_v44, %v251_v43 }
  0xd0   : > { %v238_v40 = vrot.slane %v209_v37, %v237_v32  ;;  %v217_v41 = vpop.xlane.xlu1 %216 }
  0xd1   : > { %v214_v45 = vpop.xlane.xlu0 %213  ;;  %v267_v47 = vrot.slane %v217_v41, %v237_v32 }
  0xd2   : > { %v240_v46 = vsel %vm239_vm1, %v238_v40, %v233_v42  ;;  %v263_v48 = vrot.slane %v214_v45, %v232_v33 }
  0xd3   : > { %v247_v55 = vsel %vm246_vm2, %v245_v49, %v240_v46 }
  0xd4   : > { %v223_v50 = vpop.xlane.xlu1 %222  ;;  %v268_v56 = vsel %vm239_vm1, %v267_v47, %v263_v48  ;;  %v254_v59 = vsel %vm253_vm3, %v252_v51, %v247_v55 }
  0xd5   : > { %v220_v52 = vpop.xlane.xlu0 %219  ;;  %v277_v53 = vrot.slane %v223_v50, %v251_v43 }
  0xd6   : > { %v272_v54 = vrot.slane %v220_v52, %v244_v38 }
  0xd8   : > { %v273_v57 = vsel %vm246_vm2, %v272_v54, %v268_v56 }
  0xd9   : > { %v278_v58 = vsel %vm253_vm3, %v277_v53, %v273_v57 }
  0xda   : > { %v281_v60 = vsel %vm280_vm4, %v254_v59, %v278_v58 }
  0xdb   : > { %563 = vmatmul.mubr.msk.f32.vlgmr.msra.gmra.mrb[0].mxu0 %vm287_vm5, %v281_v60 }
 0x1ae   : > { %v357_v62 = vpop.f32.mrb[0].mxu0 }
 0x1af   : > { %v361_v63 = vmax.f32 %v357_v62, 0.0  ;;  %v564_v0 = vpop.f32.mrb[1].mxu0 }
 0x1b1   : > { %568 = vmatmul.mubr.msk.f32.vlgmr.msra.gmra.mrb[0].mxu1 %vm362_vm7, %v361_v63 }
 0x284   : > { %v436_v1 = vpop.f32.mrb[0].mxu1 }
 0x285   : > { %v441_v2 = vrot.slane %v436_v1, 1  ;;  %v569_v3 = vpop.f32.mrb[1].mxu1 }
 0x287   : > { %v443_v4 = vadd.f32 %v441_v2, %v436_v1 }
 0x289   : > { %v542_v5 = vmul.f32 -1.442695, %v443_v4 }
 0x28b   : > { %627 = vpow2.f32 %v542_v5 }
 0x295   : > { %v628_v6 = vpop.eup %627 }
 0x296   : > { %v447_v7 = vadd.f32 1.0, %v628_v6 }
 0x298   : > { %629 = vrcp.f32 %v447_v7 }
 0x2a2   : > { %v630_v8 = vpop.eup %629 }
 0x2a3   : > { %451 = vst.msk [vmem:[%s187_s28] sm:$0x1] %vm450_vm8, %v630_v8 }
 0x2a4   : > { %674 = shalt.err (!%p671_p2)
}
 0x2a5   : > { %s675_s5 = scalar_lea.hbm %s890_s10, 16  ;;  %s679_s17 = scalar_lea.hbm %s937_s3, 32 }
 0x2a6   : > { %p676_p4 = scmp.ne.s32.totalorder %s890_s10, %s675_s5  ;;  %p680_p9 = scmp.lt.u32.totalorder %s890_s10, %s937_s3 }
 0x2a7   : > { %p681_p1 = scmp.lt.u32.totalorder %s679_s17, %s675_s5  ;;  %p683_p6 = scmp.lt.u32.totalorder %s675_s5, %s890_s10 }
 0x2a8   : > { %p677_p5 = pnand %p676_p4, %p944_p11 }
 0x2a9   : > { %p682_p3 = por %p681_p1, %p680_p9 }
 0x2aa   : > { %p678_p7 = pneg %p677_p5 }
 0x2ab   : > { %p684_p12 = por %p683_p6, %p682_p3 }
 0x2ad   : > { %p685_p13 = pnand %p684_p12, %p678_p7 }
 0x2af   : > { %688 = shalt.err (!%p685_p13)
}
 0x2b0   : > { %578 = dma.vmem_to_hbm [thread:$0]  (%p944_p11), %s892_s29, 16, %s890_s10, %s453_s11  }
 0x2b1 PF: > { %s477_s22 = sand.u32 1, %s715_s12   ;;  %p945_p8 = scmp.ne.s32.totalorder %s942_s25, 0 }
 0x2b2   : > { %p946_p10 = scmp.ge.s32.totalorder %s727_s15, 2  ;;  %s478_s26 = scalar_lea.sflag [#allocation4], %s477_s22 }
 0x2b4   : > { %p585_p0 = pnand %p946_p10, %p945_p8 }
 0x2b6   : > { %710 = dma.done.wait (!%p585_p0), %s478_s26, 16  }
 0x2b7   : > { %712 = vsyncadd (!%p585_p0), %s478_s26, 4294967280  ;;  %p16_p2 = scmp.ge.s32.totalorder %s781_s18, 4   ;;  %s947_s12 = smov %s719_s13 }
 0x2b8   : > { %s948_s13 = smov %s723_s14  ;;  %s949_s14 = smov %s793_s21 }
 0x2b9   : > { %s950_s15 = smov %s781_s18  ;;  %18 = sbr.rel (!%p16_p2) target bundleno = 5 (0x5), region = 77 }
 0x2c0   :  { %482 = vsyncpa [#allocation3], 1 }
 0x2c1   :  { %484 = vsyncpa [#allocation3 + $0x1], 1 }
 0x2c2   :  { %485 = vsyncpa [#allocation4], 1 }
 0x2c3   :  { %487 = vsyncpa [#allocation4 + $0x1], 1 }

</bundles_post_ra>
